<compile_context>
chip_gen: v6e
topology: v6e:2x2x1
jax: 0.10.0
libtpu: 0.0.40
codegen_flags: <defaults>
</compile_context>

<pallas_src>
import math

import jax
import jax.numpy as jnp
from jax import lax
from jax.experimental import pallas as pl
from jax.experimental.pallas import tpu as pltpu


def _round_up(x: int, m: int) -> int:
    return (x + m - 1) // m * m


def residual_linear_kernel(x_ref, w_ref, b_ref, r_ref, o_ref, acc_ref):
    # x_ref  : (tm, tk)  activation tile (matmul operand, native dtype)
    # w_ref  : (tn, tk)  weight tile, PyTorch (out_features, in_features) layout
    # b_ref  : (1,  tn)  bias tile
    # r_ref  : (tm, tn)  residual tile of x (output-aligned block)
    # o_ref  : (tm, tn)  output tile
    # acc_ref: (tm, tn)  f32 accumulator scratch, resident across the K axis
    k = pl.program_id(2)

    @pl.when(k == 0)
    def _init():
        # Fuse bias + residual into the accumulator init (single f32 cast here;
        # the MXU operands below stay in their native dtype).
        acc_ref[...] = (b_ref[...].astype(jnp.float32)
                        + r_ref[...].astype(jnp.float32))

    # x @ W^T without materializing a transposed weight: contract x's K dim
    # with the weight's in_features dim (dim 1 of both operands).
    acc_ref[...] += lax.dot_general(
        x_ref[...], w_ref[...],
        dimension_numbers=(((1,), (1,)), ((), ())),
        preferred_element_type=jnp.float32,
    )

    @pl.when(k == pl.num_programs(2) - 1)
    def _store():
        o_ref[...] = acc_ref[...].astype(o_ref.dtype)


def residual_add_linear(x, weight, bias, *, tm_max=256, tnk_max=512):
    """ResidualAdd(Linear) forward:  out = x @ weight.T + bias + x.

    x:      (..., H)   any leading batch dims
    weight: (H, H)     PyTorch nn.Linear layout (out_features, in_features)
    bias:   (H,)
    """
    orig_shape = x.shape
    H = orig_shape[-1]
    x2d = x.reshape(-1, H)
    M, K = x2d.shape
    N = weight.shape[0]
    assert weight.shape == (N, K) and N == K, "residual add needs a square Linear"

    # Tile sizes: largest cap that fits, clamped to the (8, 128)-rounded problem.
    # Since N == K we use one tile size for both, so a single padded x serves
    # as both the matmul operand and the residual.
    tm = min(tm_max, _round_up(M, 8))
    tnk = min(tnk_max, _round_up(N, 128))

    Mp = _round_up(M, tm)
    NKp = _round_up(N, tnk)

    # Zero-pad to tile multiples (padded rows/cols contribute nothing and are
    # sliced off afterwards).
    x_p = x2d if (Mp == M and NKp == K) else jnp.pad(
        x2d, ((0, Mp - M), (0, NKp - K)))
    w_p = weight if NKp == N else jnp.pad(
        weight, ((0, NKp - N), (0, NKp - K)))
    b_p = bias.reshape(1, N)
    if NKp != N:
        b_p = jnp.pad(b_p, ((0, 0), (0, NKp - N)))

    itemsize = jnp.dtype(x.dtype).itemsize
    cost = pl.CostEstimate(
        flops=2 * Mp * NKp * NKp,
        transcendentals=0,
        bytes_accessed=itemsize * (2 * Mp * NKp      # x (matmul + residual)
                                   + NKp * NKp       # weight
                                   + NKp             # bias
                                   + Mp * NKp),      # output
    )

    grid = (Mp // tm, NKp // tnk, NKp // tnk)

    out_p = pl.pallas_call(
        residual_linear_kernel,
        out_shape=jax.ShapeDtypeStruct((Mp, NKp), x.dtype),
        grid_spec=pltpu.PrefetchScalarGridSpec(
            num_scalar_prefetch=0,
            grid=grid,
            in_specs=[
                pl.BlockSpec((tm, tnk), lambda i, j, k: (i, k)),   # x (matmul)
                pl.BlockSpec((tnk, tnk), lambda i, j, k: (j, k)),  # weight (N,K)
                pl.BlockSpec((1, tnk), lambda i, j, k: (0, j)),    # bias
                pl.BlockSpec((tm, tnk), lambda i, j, k: (i, j)),   # x (residual)
            ],
            out_specs=pl.BlockSpec((tm, tnk), lambda i, j, k: (i, j)),
            scratch_shapes=[pltpu.VMEM((tm, tnk), jnp.float32)],
        ),
        compiler_params=pltpu.CompilerParams(
            dimension_semantics=("parallel", "parallel", "arbitrary"),
        ),
        cost_estimate=cost,
    )(x_p, w_p, b_p, x_p)

    return out_p[:M, :N].reshape(orig_shape)


if __name__ == "__main__":
    # Small shapes implied by the module: batch=2, seq=8, hidden=32.
    batch, seq, hidden = 2, 8, 32

    key = jax.random.PRNGKey(0)
    kx, kw, kb = jax.random.split(key, 3)

    x = jax.random.normal(kx, (batch, seq, hidden), dtype=jnp.float32)

    # Deterministic parameter init (PyTorch Linear-style uniform bound).
    bound = 1.0 / math.sqrt(hidden)
    weight = jax.random.uniform(kw, (hidden, hidden), jnp.float32, -bound, bound)
    bias = jax.random.uniform(kb, (hidden,), jnp.float32, -bound, bound)

    out = residual_add_linear(x, weight, bias)
    jax.block_until_ready(out)

    # Reference check in plain JAX (same math as the PyTorch module).
    x2d = x.reshape(batch * seq, hidden)
    ref = (x2d @ weight.T + bias + x2d).reshape(x.shape)
    assert out.shape == x.shape
    assert jnp.allclose(out, ref, atol=1e-5, rtol=1e-5)

    print("KERNEL_OK")
</pallas_src>

<mosaic_0001>
module attributes {stable_mosaic.version = 11 : i64} {
  func.func @residual_linear_kernel(%arg0: i32, %arg1: i32, %arg2: i32, %arg3: memref<16x128xf32, #tpu.memory_space<vmem>>, %arg4: memref<128x128xf32, #tpu.memory_space<vmem>>, %arg5: memref<1x128xf32, #tpu.memory_space<vmem>>, %arg6: memref<16x128xf32, #tpu.memory_space<vmem>>, %arg7: memref<16x128xf32, #tpu.memory_space<vmem>>, %arg8: memref<16x128xf32, #tpu.memory_space<vmem>>) attributes {dimension_semantics = [#tpu.dimension_semantics<parallel>, #tpu.dimension_semantics<parallel>, #tpu.dimension_semantics<arbitrary>], iteration_bounds = array<i64: 1, 1, 1>, scalar_prefetch = 0 : i64, scratch_operands = 1 : i64, tpu.core_type = #tpu.core_type<tc>, window_params = [{transform_indices = @transform_0, window_bounds = array<i64: 16, 128>}, {transform_indices = @transform_1, window_bounds = array<i64: 128, 128>}, {transform_indices = @transform_2, window_bounds = array<i64: 1, 128>}, {transform_indices = @transform_3, window_bounds = array<i64: 16, 128>}, {transform_indices = @transform_4, window_bounds = array<i64: 16, 128>}]} {
    %c0_i32 = arith.constant 0 : i32
    %0 = arith.cmpi eq, %arg2, %c0_i32 : i32
    %1 = arith.extui %0 : i1 to i32
    %c0_i32_0 = arith.constant 0 : i32
    %2 = arith.cmpi ne, %1, %c0_i32_0 : i32
    scf.if %2 {
      %c0_10 = arith.constant 0 : index
      %c0_11 = arith.constant 0 : index
      %12 = vector.load %arg5[%c0_10, %c0_11] : memref<1x128xf32, #tpu.memory_space<vmem>>, vector<1x128xf32>
      %c0_12 = arith.constant 0 : index
      %c0_13 = arith.constant 0 : index
      %13 = vector.load %arg6[%c0_12, %c0_13] : memref<16x128xf32, #tpu.memory_space<vmem>>, vector<16x128xf32>
      %14 = vector.broadcast %12 : vector<1x128xf32> to vector<16x128xf32>
      %15 = arith.addf %14, %13 : vector<16x128xf32>
      %c0_14 = arith.constant 0 : index
      %c0_15 = arith.constant 0 : index
      %16 = vector.load %arg8[%c0_14, %c0_15] : memref<16x128xf32, #tpu.memory_space<vmem>>, vector<16x128xf32>
      tpu.vector_store %arg8[%c0_14, %c0_15], %15 {strides = array<i32>} : memref<16x128xf32, #tpu.memory_space<vmem>>, vector<16x128xf32>,
    } else {
    }
    %c0 = arith.constant 0 : index
    %c0_1 = arith.constant 0 : index
    %3 = vector.load %arg8[%c0, %c0_1] : memref<16x128xf32, #tpu.memory_space<vmem>>, vector<16x128xf32>
    %c0_2 = arith.constant 0 : index
    %c0_3 = arith.constant 0 : index
    %4 = vector.load %arg3[%c0_2, %c0_3] : memref<16x128xf32, #tpu.memory_space<vmem>>, vector<16x128xf32>
    %c0_4 = arith.constant 0 : index
    %c0_5 = arith.constant 0 : index
    %5 = vector.load %arg4[%c0_4, %c0_5] : memref<128x128xf32, #tpu.memory_space<vmem>>, vector<128x128xf32>
    %cst = arith.constant dense<0.000000e+00> : vector<16x128xf32>
    %6 = tpu.matmul %4, %5, %cst {dimension_numbers = #tpu.dot_dimension_numbers<[1], [1], [0], [0], [0, 0, 1, 0], [], []>} : vector<16x128xf32>, vector<128x128xf32>, vector<16x128xf32> -> vector<16x128xf32>
    %7 = arith.addf %3, %6 : vector<16x128xf32>
    %c0_6 = arith.constant 0 : index
    %c0_7 = arith.constant 0 : index
    %8 = vector.load %arg8[%c0_6, %c0_7] : memref<16x128xf32, #tpu.memory_space<vmem>>, vector<16x128xf32>
    tpu.vector_store %arg8[%c0_6, %c0_7], %7 {strides = array<i32>} : memref<16x128xf32, #tpu.memory_space<vmem>>, vector<16x128xf32>,
    %c0_i32_8 = arith.constant 0 : i32
    %9 = arith.cmpi eq, %arg2, %c0_i32_8 : i32
    %10 = arith.extui %9 : i1 to i32
    %c0_i32_9 = arith.constant 0 : i32
    %11 = arith.cmpi ne, %10, %c0_i32_9 : i32
    scf.if %11 {
      %c0_10 = arith.constant 0 : index
      %c0_11 = arith.constant 0 : index
      %12 = vector.load %arg8[%c0_10, %c0_11] : memref<16x128xf32, #tpu.memory_space<vmem>>, vector<16x128xf32>
      %c0_12 = arith.constant 0 : index
      %c0_13 = arith.constant 0 : index
      %13 = vector.load %arg7[%c0_12, %c0_13] : memref<16x128xf32, #tpu.memory_space<vmem>>, vector<16x128xf32>
      tpu.vector_store %arg7[%c0_12, %c0_13], %12 {strides = array<i32>} : memref<16x128xf32, #tpu.memory_space<vmem>>, vector<16x128xf32>,
    } else {
    }
    return
  }
  func.func @transform_0(%arg0: i32, %arg1: i32, %arg2: i32) -> (i32, i32) {
    %c0_i32 = arith.constant 0 : i32
    return %arg0, %arg2 : i32, i32
  }
  func.func @transform_1(%arg0: i32, %arg1: i32, %arg2: i32) -> (i32, i32) {
    %c0_i32 = arith.constant 0 : i32
    return %arg1, %arg2 : i32, i32
  }
  func.func @transform_2(%arg0: i32, %arg1: i32, %arg2: i32) -> (i32, i32) {
    %c0_i32 = arith.constant 0 : i32
    %c0_i32_0 = arith.constant 0 : i32
    return %c0_i32, %arg1 : i32, i32
  }
  func.func @transform_3(%arg0: i32, %arg1: i32, %arg2: i32) -> (i32, i32) {
    %c0_i32 = arith.constant 0 : i32
    return %arg0, %arg1 : i32, i32
  }
  func.func @transform_4(%arg0: i32, %arg1: i32, %arg2: i32) -> (i32, i32) {
    %c0_i32 = arith.constant 0 : i32
    return %arg0, %arg1 : i32, i32
  }
}

</mosaic_0001>

<bundles_post_ra>
// kernel: tpu_custom_call.1
= control target key start
LH: loop header
LB: loop body
LE: loop exit
PB: predicated region body
PF: predicated region fallthrough
CT: control target
= control target key end

     0   :  { %9 = vsyncpa [#allocation4], 0  ;;  %s404_s0 = inlined_call_operand.hbm [shape: f32[16,128], index: 0, kind: input, shape index: {}]   ;;  %s405_s1 = inlined_call_operand.hbm [shape: f32[128,128], index: 1, kind: input, shape index: {}]   ;;  %s406_s2 = inlined_call_operand.vmem [shape: f32[1,128], index: 2, kind: input, shape index: {}]   ;;  %s407_s3 = inlined_call_operand.hbm [shape: f32[16,128], index: 3, kind: input, shape index: {}]   ;;  %s408_s4 = inlined_call_operand.hbm [shape: f32[16,128], index: 4, kind: output, shape index: {}]  }
   0x1   :  { %10 = vsyncpa [#allocation7], 0 }
   0x2   :  { %11 = vsyncpa [#allocation5], 0  ;;  %s346_s15 = smov [#allocation6]   ;;  %s347_s17 = smov [#allocation3]  }
   0x3   :  { %s29_s16 = sshll.u32 %s346_s15, 4  ;;  %s17_s18 = sshll.u32 %s347_s17, 4  ;;  %s30_s16 = int_to_ptr.vmem [resolvable:$true] %s29_s16  ;;  %s18_s18 = int_to_ptr.vmem [resolvable:$true] %s17_s18 }
   0x4   :  { %s268_s19 = scalar_lea.vmem %s30_s16, 2048  ;;  %p273_p1 = scmp.lt.s32.totalorder %s30_s16, %s30_s16 }
   0x5   :  { %p269_p0 = scmp.ne.s32.totalorder %s30_s16, %s268_s19  ;;  %p274_p2 = scmp.lt.s32.totalorder %s268_s19, %s268_s19 }
   0x7   :  { %p275_p3 = por %p274_p2, %p273_p1 }
   0x9   :  { %p276_p4 = pnand %p275_p3, %p269_p0 }
   0xb   :  { %279 = shalt.err (!%p276_p4)
}
   0xc   :  { %s348_s20 = smov 128   ;;  %s349_s21 = smov 8  }
   0xd   :  { %35 = dma.hbm_to_vmem [thread:$0]  %s405_s1, 2048, %s30_s16, [#allocation7], %s348_s20, %s348_s20, %s349_s21  }
   0xe   :  { %s288_s24 = scalar_lea.vmem %s18_s18, 256  ;;  %p293_p6 = scmp.lt.s32.totalorder %s18_s18, %s18_s18 }
   0xf   :  { %p289_p5 = scmp.ne.s32.totalorder %s18_s18, %s288_s24  ;;  %p294_p7 = scmp.lt.s32.totalorder %s288_s24, %s288_s24 }
  0x11   :  { %p295_p8 = por %p294_p7, %p293_p6 }
  0x13   :  { %p296_p9 = pnand %p295_p8, %p289_p5 }
  0x15   :  { %299 = shalt.err (!%p296_p9)
}
  0x16   :  { %23 = dma.hbm_to_vmem [thread:$0]  %s404_s0, 256, %s18_s18, [#allocation4], %s348_s20, %s348_s20, %s349_s21  }
  0x17   :  { %s350_s27 = smov [#allocation8]  }
  0x18   :  { %s43_s28 = sshll.u32 %s350_s27, 4  ;;  %s44_s28 = int_to_ptr.vmem [resolvable:$true] %s43_s28 }
  0x19   :  { %s308_s29 = scalar_lea.vmem %s44_s28, 256  ;;  %p313_p11 = scmp.lt.s32.totalorder %s44_s28, %s44_s28 }
  0x1a   :  { %p309_p10 = scmp.ne.s32.totalorder %s44_s28, %s308_s29  ;;  %p314_p12 = scmp.lt.s32.totalorder %s308_s29, %s308_s29 }
  0x1c   :  { %p315_p13 = por %p314_p12, %p313_p11 }
  0x1e   :  { %p316_p0 = pnand %p315_p13, %p309_p10 }
  0x20   :  { %319 = shalt.err (!%p316_p0)
}
  0x21   :  { %49 = dma.hbm_to_vmem [thread:$0]  %s407_s3, 256, %s44_s28, [#allocation7], %s348_s20, %s348_s20, %s349_s21  }
  0x22   :  { %340 = dma.done.wait [#allocation4], 256  }
  0x23   :  { %341 = vsyncadd [#allocation4], 4294967040 }
  0x24   :  { %342 = dma.done.wait [#allocation7], 2304  }
  0x25   :  { %343 = vsyncadd [#allocation7], 4294964992  ;;  %v95_v0 = vld [vmem:[#allocation6 + $0x78] sm:$0xff]  ;;  %v94_v1 = vld [vmem:[#allocation6 + $0x70] sm:$0xff]  ;;  %s351_s5 = smov [#allocation9]  }
  0x26   :  { %219 = vmatprep.subr.mxu0 %v95_v0  ;;  %v93_v2 = vld [vmem:[#allocation6 + $0x68] sm:$0xff]  ;;  %v78_v3 = vld [vmem:[#allocation3] sm:$0xff]  ;;  %v92_v4 = vld [vmem:[#allocation6 + $0x60] sm:$0xff]  ;;  %s187_s6 = sshll.u32 %s351_s5, 4  ;;  %s188_s6 = int_to_ptr.vmem [resolvable:$true] %s187_s6 }
  0x27   :  { %220 = vmatpush3.xpose.msra.mxu0 %v95_v0  ;;  %251 = vmatprep.mubr.f32.mxu0 %v78_v3  ;;  %v91_v5 = vld [vmem:[#allocation6 + $0x58] sm:$0xff]  ;;  %v90_v6 = vld [vmem:[#allocation6 + $0x50] sm:$0xff]  ;;  %v89_v7 = vld [vmem:[#allocation6 + $0x48] sm:$0xff]  ;;  %s320_s7 = scalar_lea.vmem %s188_s6, 256  ;;  %p325_p2 = scmp.lt.s32.totalorder %s188_s6, %s188_s6 }
  0x28   :  { %221 = vmatprep.subr.mxu0 %v94_v1  ;;  %v88_v8 = vld [vmem:[#allocation6 + $0x40] sm:$0xff]  ;;  %v87_v9 = vld [vmem:[#allocation6 + $0x38] sm:$0xff]  ;;  %v86_v10 = vld [vmem:[#allocation6 + $0x30] sm:$0xff]  ;;  %p321_p1 = scmp.ne.s32.totalorder %s188_s6, %s320_s7  ;;  %p326_p3 = scmp.lt.s32.totalorder %s320_s7, %s320_s7 }
  0x29   :  { %v85_v11 = vld [vmem:[#allocation6 + $0x28] sm:$0xff]  ;;  %v84_v12 = vld [vmem:[#allocation6 + $0x20] sm:$0xff]  ;;  %v83_v13 = vld [vmem:[#allocation6 + $0x18] sm:$0xff] }
  0x2a   :  { %v82_v14 = vld [vmem:[#allocation6 + $0x10] sm:$0xff]  ;;  %v81_v15 = vld [vmem:[#allocation6 + $0x8] sm:$0xff]  ;;  %v80_v16 = vld [vmem:[#allocation6] sm:$0xff]  ;;  %p327_p4 = por %p326_p3, %p325_p2 }
  0x2b   :  { %222 = vmatpush3.xpose.msra.mxu0 %v94_v1  ;;  %v79_v17 = vld [vmem:[#allocation3 + $0x8] sm:$0xff]  ;;  %v200_v18 = vld [vmem:[%s406_s2] ss:$0 sm:$0xff]  ;;  %v65_v19 = vld [vmem:[#allocation8 + $0x8] sm:$0xff] }
  0x2c   :  { %223 = vmatprep.subr.mxu0 %v93_v2  ;;  %v64_v20 = vld [vmem:[#allocation8] sm:$0xff]  ;;  %v73_v21 = vadd.f32 %v200_v18, %v65_v19  ;;  %p328_p5 = pnand %p327_p4, %p321_p1 }
  0x2d   :  { %v72_v22 = vadd.f32 %v200_v18, %v64_v20 }
  0x2f   :  { %224 = vmatpush3.xpose.msra.mxu0 %v93_v2 }
  0x30   :  { %225 = vmatprep.subr.mxu0 %v92_v4 }
  0x33   :  { %226 = vmatpush3.xpose.msra.mxu0 %v92_v4 }
  0x34   :  { %227 = vmatprep.subr.mxu0 %v91_v5 }
  0x37   :  { %228 = vmatpush3.xpose.msra.mxu0 %v91_v5 }
  0x38   :  { %229 = vmatprep.subr.mxu0 %v90_v6 }
  0x3b   :  { %230 = vmatpush3.xpose.msra.mxu0 %v90_v6 }
  0x3c   :  { %231 = vmatprep.subr.mxu0 %v89_v7 }
  0x3f   :  { %232 = vmatpush3.xpose.msra.mxu0 %v89_v7 }
  0x40   :  { %233 = vmatprep.subr.mxu0 %v88_v8 }
  0x43   :  { %234 = vmatpush3.xpose.msra.mxu0 %v88_v8 }
  0x44   :  { %235 = vmatprep.subr.mxu0 %v87_v9 }
  0x47   :  { %236 = vmatpush3.xpose.msra.mxu0 %v87_v9 }
  0x48   :  { %237 = vmatprep.subr.mxu0 %v86_v10 }
  0x4b   :  { %238 = vmatpush3.xpose.msra.mxu0 %v86_v10 }
  0x4c   :  { %239 = vmatprep.subr.mxu0 %v85_v11 }
  0x4f   :  { %240 = vmatpush3.xpose.msra.mxu0 %v85_v11 }
  0x50   :  { %241 = vmatprep.subr.mxu0 %v84_v12 }
  0x53   :  { %242 = vmatpush3.xpose.msra.mxu0 %v84_v12 }
  0x54   :  { %243 = vmatprep.subr.mxu0 %v83_v13 }
  0x57   :  { %244 = vmatpush3.xpose.msra.mxu0 %v83_v13 }
  0x58   :  { %245 = vmatprep.subr.mxu0 %v82_v14 }
  0x5b   :  { %246 = vmatpush3.xpose.msra.mxu0 %v82_v14 }
  0x5c   :  { %247 = vmatprep.subr.mxu0 %v81_v15 }
  0x5f   :  { %248 = vmatpush3.xpose.msra.mxu0 %v81_v15 }
  0x60   :  { %249 = vmatprep.subr.mxu0 %v80_v16 }
  0x63   :  { %250 = vmatpush3.xpose.msra.mxu0 %v80_v16 }
  0x66   :  { %252 = vmatmul.mubr.f32.vlgmr.msra.gmra.mxu0 %v79_v17 }
 0x126   :  { %v253_v23 = vpop.f32.mrf.mxu0 }
 0x127   :  { %v172_v24 = vadd.f32 %v253_v23, %v73_v21 }
 0x128   :  { %v162_v25 = vpop.f32.mrf.mxu0 }
 0x129   :  { %181 = vst [vmem:[#allocation9 + $0x8] sm:$0xff] %v172_v24  ;;  %v171_v26 = vadd.f32 %v162_v25, %v72_v22 }
 0x12b   :  { %180 = vst [vmem:[#allocation9] sm:$0xff] %v171_v26 }
 0x12c   :  { %331 = shalt.err (!%p328_p5)
}
 0x12d   :  { %193 = dma.vmem_to_hbm [thread:$0]  %s188_s6, 256, %s408_s4, [#allocation5], %s348_s20, %s348_s20, %s349_s21  }
 0x12e   :  { %344 = dma.done.wait [#allocation5], 256  }
 0x12f   :  { %345 = vsyncadd [#allocation5], 4294967040 }
 0x130   :  { %197 = vsyncpa [#allocation4], 1 }
 0x131   :  { %198 = vsyncpa [#allocation7], 1 }
 0x132   :  { %199 = vsyncpa [#allocation5], 1 }

</bundles_post_ra>
